<compile_context>
chip_gen: v7x
topology: tpu7x:2x2x1
jax: 0.10.0
libtpu: 0.0.40
codegen_flags: <defaults>
</compile_context>

<pallas_src>
import jax
import jax.numpy as jnp
from jax.experimental import pallas as pl
from jax.experimental.pallas import tpu as pltpu


def _neta_kernel(x_ref, w_ref, o_ref):
    # MXU matmul on bf16 operands, fp32 accumulation.  The astype is a no-op
    # when the caller already feeds bf16 x.
    a = jnp.dot(
        x_ref[...].astype(jnp.bfloat16),
        w_ref[...].astype(jnp.bfloat16),
        preferred_element_type=jnp.float32,
    )
    # SiLU(a) = a * sigmoid(a), sigmoid via tanh (single EUP push, stable).
    o_ref[...] = (a * (0.5 * jnp.tanh(0.5 * a) + 0.5)).astype(o_ref.dtype)


def _auto_block_m(M):
    """Pick a row-tile size for the grid path.

    Goals: big tiles (HBM-roofline plateau at 512-1024 rows), at least two
    grid steps (so v7x can shard the 'parallel' axis over its 2 TensorCores),
    a multiple of 8 sublanes, and <= 1024 rows so the double-buffered VMEM
    footprint stays under v5e's 16 MiB default scoped VMEM.
    """
    half = pl.cdiv(M, 2)
    bm = ((half + 7) // 8) * 8  # round up to sublane multiple
    return max(8, min(1024, bm))


def neta_forward(x, w, *, block_m=None, out_dtype=jnp.float32):
    """NetA forward: SiLU(x @ w).

    x: (M, K).  Pass bf16 x when the producer can emit it (halves the
       dominant HBM read at large M); fp32 is accepted and cast in-kernel.
    w: (K, N).  Ideally already bf16 in HBM (cast once by the caller and
       reused); fp32 is accepted as a fallback.
    out_dtype: jnp.float32 (default, matches the PyTorch module) or
       jnp.bfloat16 to halve writeback traffic when the consumer tolerates it.
    """
    M, K = x.shape
    K2, N = w.shape
    assert K == K2
    if w.dtype != jnp.bfloat16:
        # Fallback; callers should pre-cast once and keep w bf16 in HBM.
        w = w.astype(jnp.bfloat16)

    out_shape = jax.ShapeDtypeStruct((M, N), out_dtype)

    if M <= 128:
        # Genuinely tiny M (the module's nominal (4, 512) case): everything
        # fits trivially in VMEM; wall time is pallas_call launch + DMA
        # latency, so run once with no grid (no per-step overhead at all).
        # TODO(synk): for many repeated tiny calls, amortize launch cost by
        # batching callers or letting XLA fuse instead of per-call kernels.
        return pl.pallas_call(
            _neta_kernel,
            out_shape=out_shape,
            in_specs=[
                pl.BlockSpec(memory_space=pltpu.MemorySpace.VMEM),
                pl.BlockSpec(memory_space=pltpu.MemorySpace.VMEM),
            ],
            out_specs=pl.BlockSpec(memory_space=pltpu.MemorySpace.VMEM),
        )(x, w)

    if block_m is None:
        block_m = _auto_block_m(M)
    block_m = max(8, (block_m // 8) * 8)

    grid_m = pl.cdiv(M, block_m)
    # Tile M and mark the axis "parallel" so v7x can split rows across its
    # two TensorCores.  The weight block index is constant -> the bf16 weight
    # stays VMEM-resident across grid steps.  Ragged last tile is masked by
    # Pallas (OOB stores dropped), so any M is handled pipelined.
    return pl.pallas_call(
        _neta_kernel,
        out_shape=out_shape,
        grid=(grid_m,),
        in_specs=[
            pl.BlockSpec((block_m, K), lambda i: (i, 0)),
            pl.BlockSpec((K, N), lambda i: (0, 0)),
        ],
        out_specs=pl.BlockSpec((block_m, N), lambda i: (i, 0)),
        compiler_params=pltpu.CompilerParams(
            dimension_semantics=("parallel",)
        ),
    )(x, w)


def _silu(a):
    return a * jax.nn.sigmoid(a)


if __name__ == "__main__":
    key = jax.random.PRNGKey(0)
    kx, kw, kb, ki = jax.random.split(key, 4)

    # Shapes from the PyTorch module: x (4, 512), filter (512, 128) * 2.0.
    x = jax.random.normal(kx, (4, 512), dtype=jnp.float32)
    w = jax.random.normal(kw, (512, 128), dtype=jnp.float32) * 2.0
    # Keep the weight bf16 in HBM: cast once, reuse across calls.
    w_bf16 = w.astype(jnp.bfloat16)

    out = neta_forward(x, w_bf16)
    jax.block_until_ready(out)
    assert out.shape == (4, 128)
    assert out.dtype == jnp.float32

    # Reference at the same matmul precision (bf16 operands, fp32 accumulate).
    def ref_bf16(xv):
        a = jnp.dot(
            xv.astype(jnp.bfloat16), w_bf16, preferred_element_type=jnp.float32
        )
        return _silu(a)

    assert jnp.allclose(out, ref_bf16(x), atol=1e-2, rtol=1e-2)
    # Sanity vs. the full-fp32 reference (bf16 weights => ~1e-2 rel error).
    assert jnp.allclose(out, _silu(x @ w), atol=7e-1, rtol=5e-2)

    # Batched-M grid path, with bf16 x supplied by the "producer" (the
    # halved-x-read configuration the perf review targets).  M=512 ->
    # auto block_m=256 -> 2 parallel grid steps (both v7x TCs busy).
    xb = jax.random.normal(kb, (512, 512), dtype=jnp.float32).astype(
        jnp.bfloat16
    )
    out_b = neta_forward(xb, w_bf16)
    jax.block_until_ready(out_b)
    assert out_b.shape == (512, 128)
    assert jnp.allclose(out_b, ref_bf16(xb), atol=1e-2, rtol=1e-2)

    # Irregular (non-multiple) M now also goes through the pipelined cdiv
    # grid path with a masked last tile, plus bf16 output option.
    xi = jax.random.normal(ki, (300, 512), dtype=jnp.float32)
    out_i = neta_forward(xi, w_bf16, out_dtype=jnp.bfloat16)
    jax.block_until_ready(out_i)
    assert out_i.shape == (300, 128)
    assert out_i.dtype == jnp.bfloat16
    assert jnp.allclose(
        out_i.astype(jnp.float32), ref_bf16(xi), atol=5e-1, rtol=5e-2
    )

    print("KERNEL_OK")
</pallas_src>

<mosaic_0001>
module attributes {stable_mosaic.version = 11 : i64} {
  func.func @_neta_kernel(%arg0: memref<4x512xf32, #tpu.memory_space<vmem>>, %arg1: memref<512x128xbf16, #tpu.memory_space<vmem>>, %arg2: memref<4x128xf32, #tpu.memory_space<vmem>>) attributes {dimension_semantics = [], scalar_prefetch = 0 : i64, scratch_operands = 0 : i64, tpu.core_type = #tpu.core_type<tc>} {
    %c0 = arith.constant 0 : index
    %c0_0 = arith.constant 0 : index
    %0 = vector.load %arg0[%c0, %c0_0] : memref<4x512xf32, #tpu.memory_space<vmem>>, vector<4x512xf32>
    %1 = arith.truncf %0 : vector<4x512xf32> to vector<4x512xbf16>
    %c0_1 = arith.constant 0 : index
    %c0_2 = arith.constant 0 : index
    %2 = vector.load %arg1[%c0_1, %c0_2] : memref<512x128xbf16, #tpu.memory_space<vmem>>, vector<512x128xbf16>
    %cst = arith.constant dense<0.000000e+00> : vector<4x128xf32>
    %3 = tpu.matmul %1, %2, %cst {dimension_numbers = #tpu.dot_dimension_numbers<[1], [0], [0], [1], [0, 0, 1, 1], [], []>} : vector<4x512xbf16>, vector<512x128xbf16>, vector<4x128xf32> -> vector<4x128xf32>
    %cst_3 = arith.constant 5.000000e-01 : f32
    %4 = vector.broadcast %cst_3 : f32 to vector<4x128xf32>
    %5 = arith.mulf %4, %3 : vector<4x128xf32>
    %6 = math.tanh %5 : vector<4x128xf32>
    %cst_4 = arith.constant 5.000000e-01 : f32
    %7 = vector.broadcast %cst_4 : f32 to vector<4x128xf32>
    %8 = arith.mulf %7, %6 : vector<4x128xf32>
    %cst_5 = arith.constant 5.000000e-01 : f32
    %9 = vector.broadcast %cst_5 : f32 to vector<4x128xf32>
    %10 = arith.addf %8, %9 : vector<4x128xf32>
    %11 = arith.mulf %3, %10 : vector<4x128xf32>
    %c0_6 = arith.constant 0 : index
    %c0_7 = arith.constant 0 : index
    %12 = vector.load %arg2[%c0_6, %c0_7] : memref<4x128xf32, #tpu.memory_space<vmem>>, vector<4x128xf32>
    tpu.vector_store %arg2[%c0_6, %c0_7], %11 {strides = array<i32>} : memref<4x128xf32, #tpu.memory_space<vmem>>, vector<4x128xf32>,
    return
  }
}

</mosaic_0001>

<bundles_post_ra>
// kernel: tpu_custom_call.1
= control target key start
LH: loop header
LB: loop body
LE: loop exit
PB: predicated region body
PF: predicated region fallthrough
CT: control target
= control target key end

     0   :  { %7 = vsyncpa [#allocation3], 0  ;;  %s661_s0 = inlined_call_operand.hbm [shape: f32[4,512], index: 0, kind: input, shape index: {}]   ;;  %s662_s1 = inlined_call_operand.hbm [shape: bf16[512,128], index: 1, kind: input, shape index: {}]   ;;  %s663_s2 = inlined_call_operand.hbm [shape: f32[4,128], index: 2, kind: output, shape index: {}]  }
   0x1   :  { %8 = vsyncpa [#allocation6], 0 }
   0x2   :  { %9 = vsyncpa [#allocation4], 0  ;;  %s598_s9 = smov [#allocation2]   ;;  %s599_s11 = smov [#allocation5]  }
   0x3   :  { %s16_s10 = sshll.u32 %s598_s9, 4  ;;  %s25_s12 = sshll.u32 %s599_s11, 4  ;;  %s17_s10 = int_to_ptr.vmem [resolvable:$true] %s16_s10  ;;  %s618_s12 = int_to_ptr.vmem [resolvable:$true] %s25_s12 }
   0x4   :  { %s526_s15 = scalar_lea.hbm %s661_s0, 256 }
   0x5   :  { %p527_p0 = scmp.ne.s32.totalorder %s661_s0, %s526_s15  ;;  %p530_p1 = scmp.lt.u32.totalorder %s526_s15, %s661_s0 }
   0x7   :  { %p532_p2 = pnand %p530_p1, %p527_p0 }
   0x9   :  { %535 = shalt.err (!%p532_p2)
}
   0xa   :  { %s536_s20 = scalar_lea.vmem %s17_s10, 256  ;;  %p541_p4 = scmp.lt.s32.totalorder %s17_s10, %s17_s10 }
   0xb   :  { %p537_p3 = scmp.ne.s32.totalorder %s17_s10, %s536_s20  ;;  %p542_p5 = scmp.lt.s32.totalorder %s536_s20, %s536_s20 }
   0xd   :  { %p543_p6 = por %p542_p5, %p541_p4 }
   0xf   :  { %p544_p7 = pnand %p543_p6, %p537_p3 }
  0x11   :  { %547 = shalt.err (!%p544_p7)
}
  0x12   :  { %19 = dma.hbm_to_vmem [thread:$0]  %s661_s0, 256, %s17_s10, [#allocation3]  }
  0x13   :  { %s548_s25 = scalar_lea.hbm %s662_s1, 4096 }
  0x14   :  { %p549_p8 = scmp.ne.s32.totalorder %s662_s1, %s548_s25  ;;  %p552_p9 = scmp.lt.u32.totalorder %s548_s25, %s662_s1 }
  0x16   :  { %p554_p10 = pnand %p552_p9, %p549_p8 }
  0x18   :  { %557 = shalt.err (!%p554_p10)
}
  0x19   :  { %s558_s30 = scalar_lea.vmem %s618_s12, 4096  ;;  %p563_p12 = scmp.lt.s32.totalorder %s618_s12, %s618_s12 }
  0x1a   :  { %p559_p11 = scmp.ne.s32.totalorder %s618_s12, %s558_s30  ;;  %p564_p13 = scmp.lt.s32.totalorder %s558_s30, %s558_s30 }
  0x1c   :  { %p565_p0 = por %p564_p13, %p563_p12 }
  0x1e   :  { %p566_p1 = pnand %p565_p0, %p559_p11 }
  0x20   :  { %569 = shalt.err (!%p566_p1)
}
  0x21   :  { %s600_s0 = smov 64   ;;  %s601_s3 = smov 4  }
  0x22   :  { %31 = dma.hbm_to_vmem [thread:$0]  %s662_s1, 4096, %s618_s12, [#allocation6], %s600_s0, %s600_s0, %s601_s3  }
  0x23   :  { %592 = dma.done.wait [#allocation3], 256  }
  0x24   :  { %593 = vsyncadd [#allocation3], 4294967040 }
  0x25   :  { %594 = dma.done.wait [#allocation6], 4096  }
  0x26   :  { %595 = vsyncadd [#allocation6], 4294963200  ;;  %v490_v0 = vld [vmem:[#allocation5 + $0x40] sm:$0xff]   ;;  %v494_v4 = vld [vmem:[#allocation5 + $0x48] sm:$0xff]   ;;  %s602_s1 = smov [#allocation7]  }
  0x27   :  { %v491_v1 = vld [vmem:[#allocation5 + $0xc0] sm:$0xff]   ;;  %441 = vmatprep.subr.bf16.mxu0 %v490_v0  ;;  %v495_v5 = vld [vmem:[#allocation5 + $0xc8] sm:$0xff]   ;;  %v498_v8 = vld [vmem:[#allocation5 + $0x50] sm:$0xff]   ;;  %s399_s6 = sshll.u32 %s602_s1, 4  ;;  %s400_s6 = int_to_ptr.vmem [resolvable:$true] %s399_s6 }
  0x28   :  { %v492_v2 = vld [vmem:[#allocation5] sm:$0xff]   ;;  %463 = vmatprep.subr.bf16.mxu1 %v491_v1  ;;  %v496_v6 = vld [vmem:[#allocation5 + $0x8] sm:$0xff]   ;;  %v499_v9 = vld [vmem:[#allocation5 + $0xd0] sm:$0xff]   ;;  %s570_s7 = scalar_lea.vmem %s400_s6, 64  ;;  %p575_p3 = scmp.lt.s32.totalorder %s400_s6, %s400_s6 }
  0x29   :  { %v493_v3 = vld [vmem:[#allocation5 + $0x80] sm:$0xff]   ;;  %442 = vmatpush3.bf16.msra.mxu0 %v492_v2  ;;  %v497_v7 = vld [vmem:[#allocation5 + $0x88] sm:$0xff]   ;;  %v500_v10 = vld [vmem:[#allocation5 + $0x10] sm:$0xff]   ;;  %p571_p2 = scmp.ne.s32.totalorder %s400_s6, %s570_s7  ;;  %p576_p4 = scmp.lt.s32.totalorder %s570_s7, %s570_s7 }
  0x2a   :  { %464 = vmatpush3.bf16.msra.mxu1 %v493_v3  ;;  %443 = vmatprep.subr.bf16.mxu0 %v494_v4  ;;  %v501_v11 = vld [vmem:[#allocation5 + $0x90] sm:$0xff]   ;;  %v502_v12 = vld [vmem:[#allocation5 + $0x58] sm:$0xff]   ;;  %v506_v16 = vld [vmem:[#allocation5 + $0x60] sm:$0xff]  }
  0x2b   :  { %465 = vmatprep.subr.bf16.mxu1 %v495_v5  ;;  %v503_v13 = vld [vmem:[#allocation5 + $0xd8] sm:$0xff]   ;;  %v507_v17 = vld [vmem:[#allocation5 + $0xe0] sm:$0xff]   ;;  %v510_v20 = vld [vmem:[#allocation5 + $0x68] sm:$0xff]   ;;  %p577_p5 = por %p576_p4, %p575_p3 }
  0x2c   :  { %v504_v14 = vld [vmem:[#allocation5 + $0x18] sm:$0xff]   ;;  %v508_v18 = vld [vmem:[#allocation5 + $0x20] sm:$0xff]   ;;  %v511_v21 = vld [vmem:[#allocation5 + $0xe8] sm:$0xff]  }
  0x2d   :  { %444 = vmatpush3.bf16.msra.mxu0 %v496_v6  ;;  %v505_v15 = vld [vmem:[#allocation5 + $0x98] sm:$0xff]   ;;  %v509_v19 = vld [vmem:[#allocation5 + $0xa0] sm:$0xff]   ;;  %v512_v22 = vld [vmem:[#allocation5 + $0x28] sm:$0xff]   ;;  %p578_p6 = pnand %p577_p5, %p571_p2 }
  0x2e   :  { %466 = vmatpush3.bf16.msra.mxu1 %v497_v7  ;;  %445 = vmatprep.subr.bf16.mxu0 %v498_v8  ;;  %v513_v23 = vld [vmem:[#allocation5 + $0xa8] sm:$0xff]   ;;  %v514_v24 = vld [vmem:[#allocation5 + $0x70] sm:$0xff]   ;;  %v518_v28 = vld [vmem:[#allocation5 + $0x78] sm:$0xff]  }
  0x2f   :  { %467 = vmatprep.subr.bf16.mxu1 %v499_v9  ;;  %v515_v25 = vld [vmem:[#allocation5 + $0xf0] sm:$0xff]   ;;  %v519_v29 = vld [vmem:[#allocation5 + $0xf8] sm:$0xff]  }
  0x30   :  { %v516_v26 = vld [vmem:[#allocation5 + $0x30] sm:$0xff]   ;;  %v520_v30 = vld [vmem:[#allocation5 + $0x38] sm:$0xff]  }
  0x31   :  { %446 = vmatpush3.bf16.msra.mxu0 %v500_v10  ;;  %v517_v27 = vld [vmem:[#allocation5 + $0xb0] sm:$0xff]   ;;  %v521_v31 = vld [vmem:[#allocation5 + $0xb8] sm:$0xff]  }
  0x32   :  { %468 = vmatpush3.bf16.msra.mxu1 %v501_v11  ;;  %447 = vmatprep.subr.bf16.mxu0 %v502_v12  ;;  %v39_v32 = vld [vmem:[#allocation2] sm:$0xff]  ;;  %v40_v33 = vld [vmem:[#allocation2 + $0x8] sm:$0xff] }
  0x33   :  { %469 = vmatprep.subr.bf16.mxu1 %v503_v13  ;;  %v43_v34 = vcombine.high %v39_v32, %v39_v32  ;;  %v44_v35 = vcombine.high %v40_v33, %v40_v33  ;;  %v47_v36 = vpack.c.bf16 %v39_v32, %v39_v32  ;;  %v49_v37 = vpack.c.bf16 %v40_v33, %v40_v33 }
  0x35   :  { %448 = vmatpush3.bf16.msra.mxu0 %v504_v14  ;;  %v48_v38 = vpack.c.bf16 %v43_v34, %v43_v34  ;;  %v50_v39 = vpack.c.bf16 %v44_v35, %v44_v35 }
  0x36   :  { %470 = vmatpush3.bf16.msra.mxu1 %v505_v15  ;;  %449 = vmatprep.subr.bf16.mxu0 %v506_v16 }
  0x37   :  { %471 = vmatprep.subr.bf16.mxu1 %v507_v17  ;;  %339 = vmatprep.mubr.bf16.mxu0 %v48_v38 }
  0x38   :  { %379 = vmatprep.mubr.bf16.mxu1 %v50_v39 }
  0x39   :  { %450 = vmatpush3.bf16.msra.mxu0 %v508_v18 }
  0x3a   :  { %472 = vmatpush3.bf16.msra.mxu1 %v509_v19  ;;  %451 = vmatprep.subr.bf16.mxu0 %v510_v20 }
  0x3b   :  { %473 = vmatprep.subr.bf16.mxu1 %v511_v21 }
  0x3d   :  { %452 = vmatpush3.bf16.msra.mxu0 %v512_v22 }
  0x3e   :  { %474 = vmatpush3.bf16.msra.mxu1 %v513_v23  ;;  %453 = vmatprep.subr.bf16.mxu0 %v514_v24 }
  0x3f   :  { %475 = vmatprep.subr.bf16.mxu1 %v515_v25 }
  0x41   :  { %454 = vmatpush3.bf16.msra.mxu0 %v516_v26 }
  0x42   :  { %476 = vmatpush3.bf16.msra.mxu1 %v517_v27  ;;  %455 = vmatprep.subr.bf16.mxu0 %v518_v28 }
  0x43   :  { %477 = vmatprep.subr.bf16.mxu1 %v519_v29 }
  0x45   :  { %456 = vmatpush3.bf16.msra.mxu0 %v520_v30 }
  0x46   :  { %478 = vmatpush3.bf16.msra.mxu1 %v521_v31 }
  0x48   :  { %340 = vmatmul.mubr.bf16.vlgmr.msra.gmra.mrb[0].mxu0 %v47_v36 }
  0x49   :  { %380 = vmatmul.mubr.bf16.vlgmr.msra.gmra.mrb[0].mxu1 %v49_v37 }
 0x11b   :  { %v457_v40 = vpop.f32.mrb[0].mxu0 }
 0x11c   :  { %v479_v41 = vpop.f32.mrb[0].mxu1  ;;  %v458_v42 = vpop.f32.mrb[1].mxu0 }
 0x11d   :  { %v480_v43 = vpop.f32.mrb[1].mxu1  ;;  %v459_v44 = vadd.f32 %v458_v42, %v457_v40  ;;  %v460_v46 = vpop.f32.mrb[2].mxu0 }
 0x11e   :  { %v481_v45 = vadd.f32 %v480_v43, %v479_v41  ;;  %v482_v47 = vpop.f32.mrb[2].mxu1  ;;  %v461_v48 = vpop.f32.mrb[3].mxu0 }
 0x11f   :  { %v483_v49 = vpop.f32.mrb[3].mxu1 }
 0x120   :  { %v382_v50 = vadd.f32 %v481_v45, %v459_v44 }
 0x122   :  { %v387_v51 = vmul.f32 0.5, %v382_v50 }
 0x124   :  { %524 = vtanh.f32 %v387_v51 }
 0x12e   :  { %v525_v52 = vpop.eup %524 }
 0x12f   :  { %v389_v53 = vmul.f32 0.5, %v525_v52 }
 0x131   :  { %v390_v54 = vadd.f32 0.5, %v389_v53 }
 0x133   :  { %v391_v55 = vmul.f32 %v390_v54, %v382_v50 }
 0x135   :  { %392 = vst [vmem:[#allocation7] sm:$0xf] %v391_v55 }
 0x136   :  { %581 = shalt.err (!%p578_p6)
}
 0x137   :  { %s582_s10 = scalar_lea.hbm %s663_s2, 64 }
 0x138   :  { %p583_p7 = scmp.ne.s32.totalorder %s663_s2, %s582_s10  ;;  %p586_p8 = scmp.lt.u32.totalorder %s582_s10, %s663_s2 }
 0x13a   :  { %p588_p9 = pnand %p586_p8, %p583_p7 }
 0x13c   :  { %591 = shalt.err (!%p588_p9)
}
 0x13d   :  { %402 = dma.vmem_to_hbm [thread:$0]  %s400_s6, 64, %s663_s2, [#allocation4]  }
 0x13e   :  { %596 = dma.done.wait [#allocation4], 64  }
 0x13f   :  { %597 = vsyncadd [#allocation4], 4294967232 }
 0x140   :  { %406 = vsyncpa [#allocation3], 1 }
 0x141   :  { %407 = vsyncpa [#allocation6], 1 }
 0x142   :  { %408 = vsyncpa [#allocation4], 1 }

</bundles_post_ra>
